<compile_context>
chip_gen: v5e
topology: v5e:2x2
jax: 0.10.0
libtpu: 0.0.40
codegen_flags: <defaults>
</compile_context>

<pallas_src>
import functools

import jax
import jax.numpy as jnp
from jax.experimental import pallas as pl
from jax.experimental.pallas import tpu as pltpu

_LANE = 128
_SUB = 8
_MAX_BLOCK_ROWS = 8192      # (8192, 128) f32 = 4 MiB per pipeline buffer
_MAX_HW_BLOCK = 8192        # lane-axis block for the 1x1-align path


def _vmem_limit_bytes():
    # ~48 MiB ceiling on v7x (64 MiB physical), ~100 MiB on v5e/v6e (128 MiB);
    # default scoped limits (16/32 MiB) are too small for the big blocks.
    try:
        cap = pltpu.get_tpu_info().vmem_capacity_bytes
    except Exception:
        cap = 64 << 20
    return int(min(cap - (16 << 20), 100 << 20))


# ------------------------------ logit losses ------------------------------- #

def _logit_losses_kernel(s_ref, t_ref, tgt_ref, ce_ref, kl_ref, *,
                         temperature, with_task):
    """Per-row task-CE and KL(T) partial sums for one batch-row block."""
    s = s_ref[...].astype(jnp.float32)            # (tb, C)
    t = t_ref[...].astype(jnp.float32)            # (tb, C)

    # Shared student row-max (max(s/T) == max(s)/T, compute once).
    s_shift = s - jnp.max(s, axis=-1, keepdims=True)

    if with_task:
        # TODO(synk): the real task criterion is MultiBoxLoss (an external
        #             callable in the PyTorch module); mean cross-entropy
        #             stands in for the self-contained test.
        logp = s_shift - jnp.log(jnp.sum(jnp.exp(s_shift), axis=-1,
                                         keepdims=True))
        lane = jax.lax.broadcasted_iota(jnp.int32, s.shape, 1)
        picked = jnp.where(lane == tgt_ref[...], logp, 0.0)
        ce_ref[...] = -jnp.sum(picked, axis=-1, keepdims=True)
    else:
        ce_ref[...] = jnp.zeros_like(ce_ref)

    inv_t = 1.0 / temperature
    ss = s_shift * inv_t                                    # log_softmax(s/T)
    log_q = ss - jnp.log(jnp.sum(jnp.exp(ss), axis=-1, keepdims=True))

    ts = (t - jnp.max(t, axis=-1, keepdims=True)) * inv_t   # softmax(t/T)
    t_exp = jnp.exp(ts)
    t_sum = jnp.sum(t_exp, axis=-1, keepdims=True)
    log_p = ts - jnp.log(t_sum)
    p = t_exp / t_sum           # exact division (parity with PyTorch ref)

    kl_ref[...] = jnp.sum(p * (log_p - log_q), axis=-1, keepdims=True)


def _pick_row_block(batch, num_classes, budget=24 << 20):
    # 2 inputs x 2 pipeline buffers x tb x C x 4B must fit the budget.
    tb = budget // (num_classes * 4 * 4)
    tb = max(_SUB, min(512, (tb // _SUB) * _SUB))
    return batch if batch <= tb else tb


def logit_losses(student_logits, teacher_logits, targets, temperature,
                 with_task=True):
    """Fused task-CE + KL distillation, gridded over batch-row blocks."""
    batch, num_classes = student_logits.shape
    tgt = jnp.asarray(targets).reshape(batch, 1).astype(jnp.int32)
    tb = _pick_row_block(batch, num_classes)
    grid = pl.cdiv(batch, tb)

    kernel = functools.partial(_logit_losses_kernel,
                               temperature=float(temperature),
                               with_task=with_task)
    ce, kl = pl.pallas_call(
        kernel,
        out_shape=(jax.ShapeDtypeStruct((batch, 1), jnp.float32),
                   jax.ShapeDtypeStruct((batch, 1), jnp.float32)),
        grid=(grid,),
        in_specs=[pl.BlockSpec((tb, num_classes), lambda i: (i, 0)),
                  pl.BlockSpec((tb, num_classes), lambda i: (i, 0)),
                  pl.BlockSpec((tb, 1), lambda i: (i, 0))],
        out_specs=(pl.BlockSpec((tb, 1), lambda i: (i, 0)),
                   pl.BlockSpec((tb, 1), lambda i: (i, 0))),
        compiler_params=pltpu.CompilerParams(
            dimension_semantics=("parallel",),
            vmem_limit_bytes=_vmem_limit_bytes()),
    )(student_logits, teacher_logits, tgt)

    task_loss = jnp.sum(ce) / batch
    distill_loss = jnp.sum(kl) * (temperature * temperature) / batch
    return task_loss, distill_loss


# ------------------------------ feature MSE -------------------------------- #

def _sq_diff_sum_kernel(x_ref, y_ref, acc_ref, *, rows, block_rows):
    """Gridded sum of squared differences into an (8,128) vreg accumulator."""
    step = pl.program_id(0)

    @pl.when(step == 0)
    def _():
        acc_ref[...] = jnp.zeros_like(acc_ref)

    def _accum(masked):
        d = x_ref[...].astype(jnp.float32) - y_ref[...].astype(jnp.float32)
        sq = d * d
        if masked:
            r = step * block_rows + jax.lax.broadcasted_iota(
                jnp.int32, sq.shape, 0)
            sq = jnp.where(r < rows, sq, 0.0)
        # Fold the row block onto the (8,128) accumulator: pure VPU adds; the
        # single cross-lane reduce happens once, in the XLA epilogue.
        acc_ref[...] += jnp.sum(
            sq.reshape(block_rows // _SUB, _SUB, _LANE), axis=0)

    if rows % block_rows != 0:
        is_last = step == pl.num_programs(0) - 1
        pl.when(jnp.logical_not(is_last))(lambda: _accum(False))
        pl.when(is_last)(lambda: _accum(True))   # mask OOB rows on last block only
    else:
        _accum(False)


def mse_loss(x, y):
    """Mean squared error; flattened lane-dense (-1, 128), no block padding."""
    n = x.size
    xf = x.reshape(-1)
    yf = y.reshape(-1)
    unit = _SUB * _LANE
    rem = n % unit
    if rem:
        # Minimal pad to a single (8,128) tile only; real feature maps are
        # normally already multiples of 1024 elements, so this is skipped.
        xf = jnp.pad(xf, (0, unit - rem))
        yf = jnp.pad(yf, (0, unit - rem))
    rows = xf.shape[0] // _LANE
    xf = xf.reshape(rows, _LANE)
    yf = yf.reshape(rows, _LANE)

    block_rows = rows if rows <= _MAX_BLOCK_ROWS else _MAX_BLOCK_ROWS
    grid = pl.cdiv(rows, block_rows)

    # TODO(synk): on v7x, split this reduction across both TensorCores with a
    #             leading "parallel" axis and per-core partial accumulators.
    acc = pl.pallas_call(
        functools.partial(_sq_diff_sum_kernel, rows=rows,
                          block_rows=block_rows),
        out_shape=jax.ShapeDtypeStruct((_SUB, _LANE), jnp.float32),
        grid=(grid,),
        in_specs=[pl.BlockSpec((block_rows, _LANE), lambda i: (i, 0)),
                  pl.BlockSpec((block_rows, _LANE), lambda i: (i, 0))],
        out_specs=pl.BlockSpec((_SUB, _LANE), lambda i: (0, 0)),
        compiler_params=pltpu.CompilerParams(
            dimension_semantics=("arbitrary",),
            vmem_limit_bytes=_vmem_limit_bytes()),
    )(xf, yf)
    return jnp.sum(acc) / n


def _align_sq_diff_kernel(s_ref, w_ref, b_ref, t_ref, acc_ref, *,
                          nb, hw, hw_block):
    """1x1-conv channel alignment (NCHW, H*W on lanes) + squared-diff sum."""
    i_n = pl.program_id(0)
    i_hw = pl.program_id(1)

    @pl.when(jnp.logical_and(i_n == 0, i_hw == 0))
    def _():
        acc_ref[...] = jnp.zeros_like(acc_ref)

    w = w_ref[...].astype(jnp.float32)              # (C_out, C_in)
    b = b_ref[...].astype(jnp.float32)              # (C_out, 1)

    def _accum(masked):
        total = jnp.zeros((1, 1), jnp.float32)
        for ni in range(nb):                        # small static unroll
            s = s_ref[ni].astype(jnp.float32)       # (C_in,  hw_block)
            t = t_ref[ni].astype(jnp.float32)       # (C_out, hw_block)
            aligned = jnp.dot(w, s, preferred_element_type=jnp.float32) + b
            d = aligned - t
            sq = d * d
            if masked:
                col = i_hw * hw_block + jax.lax.broadcasted_iota(
                    jnp.int32, sq.shape, 1)
                sq = jnp.where(col < hw, sq, 0.0)
            total = total + jnp.sum(sq, keepdims=True)
        acc_ref[...] += total

    if hw % hw_block != 0:
        is_last = i_hw == pl.num_programs(1) - 1
        pl.when(jnp.logical_not(is_last))(lambda: _accum(False))
        pl.when(is_last)(lambda: _accum(True))      # mask only the ragged tail
    else:
        _accum(False)


def aligned_mse_loss(s_feat_nchw, t_feat_nchw, weight, bias, *, nb_target=8):
    """MSE(conv1x1(s), t) with features kept NCHW (H*W on the lane axis)."""
    n, c_in, h, w = s_feat_nchw.shape
    c_out = t_feat_nchw.shape[1]
    hw = h * w

    s3 = s_feat_nchw.reshape(n, c_in, hw)
    t3 = t_feat_nchw.reshape(n, c_out, hw)
    w2 = weight.astype(jnp.float32)
    b2 = bias.reshape(c_out, 1).astype(jnp.float32)

    # Batch several images per grid step to amortize per-step overhead for
    # small feature maps; nb = largest divisor of n that is <= nb_target.
    nb = 1
    for d in range(min(nb_target, n), 0, -1):
        if n % d == 0:
            nb = d
            break

    hw_block = hw if hw <= _MAX_HW_BLOCK else _MAX_HW_BLOCK
    n_hw_blocks = pl.cdiv(hw, hw_block)

    acc = pl.pallas_call(
        functools.partial(_align_sq_diff_kernel, nb=nb, hw=hw,
                          hw_block=hw_block),
        out_shape=jax.ShapeDtypeStruct((1, 1), jnp.float32),
        grid=(n // nb, n_hw_blocks),
        in_specs=[pl.BlockSpec((nb, c_in, hw_block), lambda i, j: (i, 0, j)),
                  pl.BlockSpec((c_out, c_in), lambda i, j: (0, 0)),
                  pl.BlockSpec((c_out, 1), lambda i, j: (0, 0)),
                  pl.BlockSpec((nb, c_out, hw_block), lambda i, j: (i, 0, j))],
        out_specs=pl.BlockSpec((1, 1), lambda i, j: (0, 0)),
        compiler_params=pltpu.CompilerParams(
            dimension_semantics=("arbitrary", "arbitrary"),
            vmem_limit_bytes=_vmem_limit_bytes()),
    )(s3, w2, b2, t3)
    return acc[0, 0] / float(n * c_out * hw)


# ------------------------------- module glue ------------------------------- #

def make_align_params(key, c_in, c_out):
    # TODO(synk): the PyTorch module creates a FRESH nn.Conv2d(c_in,c_out,1)
    #             every forward; deterministic params emulating its default
    #             init (U(-1/sqrt(c_in), 1/sqrt(c_in))) are passed in instead.
    kw, kb = jax.random.split(key)
    bound = 1.0 / float(c_in) ** 0.5
    weight = jax.random.uniform(kw, (c_out, c_in), jnp.float32, -bound, bound)
    bias = jax.random.uniform(kb, (c_out,), jnp.float32, -bound, bound)
    return weight, bias


def distillation_loss(student_outputs, teacher_outputs, targets,
                      criterion=None, align_params=None,
                      temperature=4.0, alpha=0.7, feature_weight=0.1):
    student_logits, student_features = student_outputs
    teacher_logits, teacher_features = teacher_outputs

    if criterion is None:
        task_loss, distill_loss = logit_losses(
            student_logits, teacher_logits, targets, temperature,
            with_task=True)
    else:
        task_loss = criterion(student_logits, targets)
        _, distill_loss = logit_losses(
            student_logits, teacher_logits, targets, temperature,
            with_task=False)

    feature_loss = jnp.float32(0.0)
    if student_features and teacher_features:
        for idx, (s_feat, t_feat) in enumerate(zip(student_features,
                                                   teacher_features)):
            if s_feat.shape[1] != t_feat.shape[1]:
                weight, bias = align_params[idx]
                feature_loss = feature_loss + aligned_mse_loss(
                    s_feat, t_feat, weight, bias)
            else:
                feature_loss = feature_loss + mse_loss(s_feat, t_feat)

    total_loss = ((1.0 - alpha) * task_loss
                  + alpha * distill_loss
                  + feature_weight * feature_loss)
    return total_loss, task_loss, distill_loss, feature_loss


def _reference(student_outputs, teacher_outputs, targets, align_params,
               temperature=4.0, alpha=0.7, feature_weight=0.1):
    """Pure-JAX reference matching the PyTorch module semantics."""
    s_logits, s_feats = student_outputs
    t_logits, t_feats = teacher_outputs
    logp = jax.nn.log_softmax(s_logits, axis=-1)
    task = -jnp.mean(jnp.take_along_axis(logp, targets[:, None], axis=-1))
    s_soft = jax.nn.log_softmax(s_logits / temperature, axis=-1)
    t_soft = jax.nn.softmax(t_logits / temperature, axis=-1)
    kl = jnp.sum(t_soft * (jnp.log(t_soft) - s_soft)) / s_logits.shape[0]
    distill = kl * temperature ** 2
    feat = jnp.float32(0.0)
    for idx, (sf, tf) in enumerate(zip(s_feats, t_feats)):
        if sf.shape[1] != tf.shape[1]:
            w, b = align_params[idx]
            sf = jnp.einsum('oc,nchw->nohw', w, sf) + b[None, :, None, None]
        feat = feat + jnp.mean((sf - tf) ** 2)
    total = (1 - alpha) * task + alpha * distill + feature_weight * feat
    return total, task, distill, feat


# ---------------------------------- main ------------------------------------ #

if __name__ == "__main__":
    key = jax.random.PRNGKey(0)
    ks = jax.random.split(key, 8)

    B, num_classes = 4, 128
    student_logits = jax.random.normal(ks[0], (B, num_classes), jnp.float32)
    teacher_logits = jax.random.normal(ks[1], (B, num_classes), jnp.float32)
    targets = jax.random.randint(ks[2], (B,), 0, num_classes, jnp.int32)

    # Two intermediate feature pairs (NCHW); the first needs channel alignment.
    s_f1 = jax.random.normal(ks[3], (B, 8, 16, 16), jnp.float32)
    t_f1 = jax.random.normal(ks[4], (B, 16, 16, 16), jnp.float32)
    s_f2 = jax.random.normal(ks[5], (B, 16, 8, 8), jnp.float32)
    t_f2 = jax.random.normal(ks[6], (B, 16, 8, 8), jnp.float32)

    student_features = [s_f1, s_f2]
    teacher_features = [t_f1, t_f2]
    align_params = {0: make_align_params(ks[7], s_f1.shape[1], t_f1.shape[1])}

    loss_fn = jax.jit(lambda so, to, tg, ap: distillation_loss(
        so, to, tg, criterion=None, align_params=ap,
        temperature=4.0, alpha=0.7, feature_weight=0.1))

    outs = loss_fn((student_logits, student_features),
                   (teacher_logits, teacher_features),
                   targets, align_params)
    outs = jax.block_until_ready(outs)

    refs = _reference((student_logits, student_features),
                      (teacher_logits, teacher_features),
                      targets, align_params)
    for got, want in zip(outs, refs):
        assert jnp.allclose(got, want, rtol=2e-3, atol=2e-4), (got, want)

    print("KERNEL_OK")
</pallas_src>

<mosaic_0001>
module attributes {stable_mosaic.version = 11 : i64} {
  func.func @_logit_losses_kernel(%arg0: i32, %arg1: memref<4x128xf32, #tpu.memory_space<vmem>>, %arg2: memref<4x128xf32, #tpu.memory_space<vmem>>, %arg3: memref<4x1xi32, #tpu.memory_space<vmem>>, %arg4: memref<4x1xf32, #tpu.memory_space<vmem>>, %arg5: memref<4x1xf32, #tpu.memory_space<vmem>>) attributes {dimension_semantics = [#tpu.dimension_semantics<parallel>], iteration_bounds = array<i64: 1>, scalar_prefetch = 0 : i64, scratch_operands = 0 : i64, tpu.core_type = #tpu.core_type<tc>, window_params = [{transform_indices = @transform_0, window_bounds = array<i64: 4, 128>}, {transform_indices = @transform_1, window_bounds = array<i64: 4, 128>}, {transform_indices = @transform_2, window_bounds = array<i64: 4, 1>}, {transform_indices = @transform_3, window_bounds = array<i64: 4, 1>}, {transform_indices = @transform_4, window_bounds = array<i64: 4, 1>}]} {
    %c0 = arith.constant 0 : index
    %c0_0 = arith.constant 0 : index
    %0 = vector.load %arg1[%c0, %c0_0] : memref<4x128xf32, #tpu.memory_space<vmem>>, vector<4x128xf32>
    %c0_1 = arith.constant 0 : index
    %c0_2 = arith.constant 0 : index
    %1 = vector.load %arg2[%c0_1, %c0_2] : memref<4x128xf32, #tpu.memory_space<vmem>>, vector<4x128xf32>
    %cst = arith.constant dense<0xFF800000> : vector<4xf32>
    %2 = vector.multi_reduction <maximumf>, %0, %cst [1] : vector<4x128xf32> to vector<4xf32>
    %3 = vector.shape_cast %2 : vector<4xf32> to vector<4x1xf32>
    %4 = vector.broadcast %3 : vector<4x1xf32> to vector<4x128xf32>
    %5 = arith.subf %0, %4 : vector<4x128xf32>
    %6 = math.exp %5 : vector<4x128xf32>
    %cst_3 = arith.constant dense<0.000000e+00> : vector<4xf32>
    %7 = vector.multi_reduction <add>, %6, %cst_3 [1] : vector<4x128xf32> to vector<4xf32>
    %8 = vector.shape_cast %7 : vector<4xf32> to vector<4x1xf32>
    %9 = math.log %8 : vector<4x1xf32>
    %10 = vector.broadcast %9 : vector<4x1xf32> to vector<4x128xf32>
    %11 = arith.subf %5, %10 : vector<4x128xf32>
    %12 = tpu.iota {dimensions = array<i32: 1>} : vector<4x128xi32>
    %c0_4 = arith.constant 0 : index
    %c0_5 = arith.constant 0 : index
    %13 = vector.load %arg3[%c0_4, %c0_5] : memref<4x1xi32, #tpu.memory_space<vmem>>, vector<4x1xi32>
    %14 = vector.broadcast %13 : vector<4x1xi32> to vector<4x128xi32>
    %15 = arith.cmpi eq, %12, %14 : vector<4x128xi32>
    %cst_6 = arith.constant 0.000000e+00 : f32
    %16 = vector.broadcast %cst_6 : f32 to vector<4x128xf32>
    %17 = arith.select %15, %11, %16 : vector<4x128xi1>, vector<4x128xf32>
    %cst_7 = arith.constant dense<0.000000e+00> : vector<4xf32>
    %18 = vector.multi_reduction <add>, %17, %cst_7 [1] : vector<4x128xf32> to vector<4xf32>
    %19 = vector.shape_cast %18 : vector<4xf32> to vector<4x1xf32>
    %cst_8 = arith.constant 0.000000e+00 : f32
    %20 = vector.broadcast %cst_8 : f32 to vector<4x1xf32>
    %21 = arith.subf %20, %19 : vector<4x1xf32>
    %c0_9 = arith.constant 0 : index
    %c0_10 = arith.constant 0 : index
    %22 = vector.load %arg4[%c0_9, %c0_10] : memref<4x1xf32, #tpu.memory_space<vmem>>, vector<4x1xf32>
    tpu.vector_store %arg4[%c0_9, %c0_10], %21 {strides = array<i32>} : memref<4x1xf32, #tpu.memory_space<vmem>>, vector<4x1xf32>,
    %cst_11 = arith.constant 2.500000e-01 : f32
    %23 = vector.broadcast %cst_11 : f32 to vector<4x128xf32>
    %24 = arith.mulf %5, %23 : vector<4x128xf32>
    %25 = math.exp %24 : vector<4x128xf32>
    %cst_12 = arith.constant dense<0.000000e+00> : vector<4xf32>
    %26 = vector.multi_reduction <add>, %25, %cst_12 [1] : vector<4x128xf32> to vector<4xf32>
    %27 = vector.shape_cast %26 : vector<4xf32> to vector<4x1xf32>
    %28 = math.log %27 : vector<4x1xf32>
    %29 = vector.broadcast %28 : vector<4x1xf32> to vector<4x128xf32>
    %30 = arith.subf %24, %29 : vector<4x128xf32>
    %cst_13 = arith.constant dense<0xFF800000> : vector<4xf32>
    %31 = vector.multi_reduction <maximumf>, %1, %cst_13 [1] : vector<4x128xf32> to vector<4xf32>
    %32 = vector.shape_cast %31 : vector<4xf32> to vector<4x1xf32>
    %33 = vector.broadcast %32 : vector<4x1xf32> to vector<4x128xf32>
    %34 = arith.subf %1, %33 : vector<4x128xf32>
    %cst_14 = arith.constant 2.500000e-01 : f32
    %35 = vector.broadcast %cst_14 : f32 to vector<4x128xf32>
    %36 = arith.mulf %34, %35 : vector<4x128xf32>
    %37 = math.exp %36 : vector<4x128xf32>
    %cst_15 = arith.constant dense<0.000000e+00> : vector<4xf32>
    %38 = vector.multi_reduction <add>, %37, %cst_15 [1] : vector<4x128xf32> to vector<4xf32>
    %39 = vector.shape_cast %38 : vector<4xf32> to vector<4x1xf32>
    %40 = math.log %39 : vector<4x1xf32>
    %41 = vector.broadcast %40 : vector<4x1xf32> to vector<4x128xf32>
    %42 = arith.subf %36, %41 : vector<4x128xf32>
    %43 = vector.broadcast %39 : vector<4x1xf32> to vector<4x128xf32>
    %44 = arith.divf %37, %43 : vector<4x128xf32>
    %45 = arith.subf %42, %30 : vector<4x128xf32>
    %46 = arith.mulf %44, %45 : vector<4x128xf32>
    %cst_16 = arith.constant dense<0.000000e+00> : vector<4xf32>
    %47 = vector.multi_reduction <add>, %46, %cst_16 [1] : vector<4x128xf32> to vector<4xf32>
    %48 = vector.shape_cast %47 : vector<4xf32> to vector<4x1xf32>
    %c0_17 = arith.constant 0 : index
    %c0_18 = arith.constant 0 : index
    %49 = vector.load %arg5[%c0_17, %c0_18] : memref<4x1xf32, #tpu.memory_space<vmem>>, vector<4x1xf32>
    tpu.vector_store %arg5[%c0_17, %c0_18], %48 {strides = array<i32>} : memref<4x1xf32, #tpu.memory_space<vmem>>, vector<4x1xf32>,
    return
  }
  func.func @transform_0(%arg0: i32) -> (i32, i32) {
    %c0_i32 = arith.constant 0 : i32
    %c0_i32_0 = arith.constant 0 : i32
    return %arg0, %c0_i32 : i32, i32
  }
  func.func @transform_1(%arg0: i32) -> (i32, i32) {
    %c0_i32 = arith.constant 0 : i32
    %c0_i32_0 = arith.constant 0 : i32
    return %arg0, %c0_i32 : i32, i32
  }
  func.func @transform_2(%arg0: i32) -> (i32, i32) {
    %c0_i32 = arith.constant 0 : i32
    %c0_i32_0 = arith.constant 0 : i32
    return %arg0, %c0_i32 : i32, i32
  }
  func.func @transform_3(%arg0: i32) -> (i32, i32) {
    %c0_i32 = arith.constant 0 : i32
    %c0_i32_0 = arith.constant 0 : i32
    return %arg0, %c0_i32 : i32, i32
  }
  func.func @transform_4(%arg0: i32) -> (i32, i32) {
    %c0_i32 = arith.constant 0 : i32
    %c0_i32_0 = arith.constant 0 : i32
    return %arg0, %c0_i32 : i32, i32
  }
}

module attributes {stable_mosaic.version = 11 : i64} {
  func.func @_sq_diff_sum_kernel(%arg0: i32, %arg1: memref<32x128xf32, #tpu.memory_space<vmem>>, %arg2: memref<32x128xf32, #tpu.memory_space<vmem>>, %arg3: memref<8x128xf32, #tpu.memory_space<vmem>>) attributes {dimension_semantics = [#tpu.dimension_semantics<arbitrary>], iteration_bounds = array<i64: 1>, scalar_prefetch = 0 : i64, scratch_operands = 0 : i64, tpu.core_type = #tpu.core_type<tc>, window_params = [{transform_indices = @transform_0, window_bounds = array<i64: 32, 128>}, {transform_indices = @transform_1, window_bounds = array<i64: 32, 128>}, {pipeline_mode = #tpu.pipeline_mode<synchronous>, transform_indices = @transform_2, window_bounds = array<i64: 8, 128>}]} {
    %c0_i32 = arith.constant 0 : i32
    %0 = arith.cmpi eq, %arg0, %c0_i32 : i32
    %1 = arith.extui %0 : i1 to i32
    %c0_i32_0 = arith.constant 0 : i32
    %2 = arith.cmpi ne, %1, %c0_i32_0 : i32
    scf.if %2 {
      %cst_8 = arith.constant 0.000000e+00 : f32
      %12 = vector.broadcast %cst_8 : f32 to vector<8x128xf32>
      %c0_9 = arith.constant 0 : index
      %c0_10 = arith.constant 0 : index
      %13 = vector.load %arg3[%c0_9, %c0_10] : memref<8x128xf32, #tpu.memory_space<vmem>>, vector<8x128xf32>
      tpu.vector_store %arg3[%c0_9, %c0_10], %12 {strides = array<i32>} : memref<8x128xf32, #tpu.memory_space<vmem>>, vector<8x128xf32>,
    } else {
    }
    %c0 = arith.constant 0 : index
    %c0_1 = arith.constant 0 : index
    %3 = vector.load %arg1[%c0, %c0_1] : memref<32x128xf32, #tpu.memory_space<vmem>>, vector<32x128xf32>
    %c0_2 = arith.constant 0 : index
    %c0_3 = arith.constant 0 : index
    %4 = vector.load %arg2[%c0_2, %c0_3] : memref<32x128xf32, #tpu.memory_space<vmem>>, vector<32x128xf32>
    %5 = arith.subf %3, %4 : vector<32x128xf32>
    %6 = arith.mulf %5, %5 : vector<32x128xf32>
    %c0_4 = arith.constant 0 : index
    %c0_5 = arith.constant 0 : index
    %7 = vector.load %arg3[%c0_4, %c0_5] : memref<8x128xf32, #tpu.memory_space<vmem>>, vector<8x128xf32>
    %8 = vector.shape_cast %6 : vector<32x128xf32> to vector<4x8x128xf32>
    %cst = arith.constant dense<0.000000e+00> : vector<8x128xf32>
    %9 = vector.multi_reduction <add>, %8, %cst [0] : vector<4x8x128xf32> to vector<8x128xf32>
    %10 = arith.addf %7, %9 : vector<8x128xf32>
    %c0_6 = arith.constant 0 : index
    %c0_7 = arith.constant 0 : index
    %11 = vector.load %arg3[%c0_6, %c0_7] : memref<8x128xf32, #tpu.memory_space<vmem>>, vector<8x128xf32>
    tpu.vector_store %arg3[%c0_6, %c0_7], %10 {strides = array<i32>} : memref<8x128xf32, #tpu.memory_space<vmem>>, vector<8x128xf32>,
    return
  }
  func.func @transform_0(%arg0: i32) -> (i32, i32) {
    %c0_i32 = arith.constant 0 : i32
    %c0_i32_0 = arith.constant 0 : i32
    return %arg0, %c0_i32 : i32, i32
  }
  func.func @transform_1(%arg0: i32) -> (i32, i32) {
    %c0_i32 = arith.constant 0 : i32
    %c0_i32_0 = arith.constant 0 : i32
    return %arg0, %c0_i32 : i32, i32
  }
  func.func @transform_2(%arg0: i32) -> (i32, i32) {
    %c0_i32 = arith.constant 0 : i32
    %c0_i32_0 = arith.constant 0 : i32
    %c0_i32_1 = arith.constant 0 : i32
    return %c0_i32, %c0_i32_0 : i32, i32
  }
}

module attributes {stable_mosaic.version = 11 : i64} {
  func.func @_align_sq_diff_kernel(%arg0: i32, %arg1: i32, %arg2: memref<4x8x256xf32, #tpu.memory_space<vmem>>, %arg3: memref<16x8xf32, #tpu.memory_space<vmem>>, %arg4: memref<16x1xf32, #tpu.memory_space<vmem>>, %arg5: memref<4x16x256xf32, #tpu.memory_space<vmem>>, %arg6: memref<1x1xf32, #tpu.memory_space<vmem>>) attributes {dimension_semantics = [#tpu.dimension_semantics<arbitrary>, #tpu.dimension_semantics<arbitrary>], iteration_bounds = array<i64: 1, 1>, scalar_prefetch = 0 : i64, scratch_operands = 0 : i64, tpu.core_type = #tpu.core_type<tc>, window_params = [{transform_indices = @transform_0, window_bounds = array<i64: 4, 8, 256>}, {pipeline_mode = #tpu.pipeline_mode<synchronous>, transform_indices = @transform_1, window_bounds = array<i64: 16, 8>}, {pipeline_mode = #tpu.pipeline_mode<synchronous>, transform_indices = @transform_2, window_bounds = array<i64: 16, 1>}, {transform_indices = @transform_3, window_bounds = array<i64: 4, 16, 256>}, {pipeline_mode = #tpu.pipeline_mode<synchronous>, transform_indices = @transform_4, window_bounds = array<i64: 1, 1>}]} {
    %c0_i32 = arith.constant 0 : i32
    %0 = arith.cmpi eq, %arg0, %c0_i32 : i32
    %c0_i32_0 = arith.constant 0 : i32
    %1 = arith.cmpi eq, %arg1, %c0_i32_0 : i32
    %2 = arith.andi %0, %1 : i1
    %3 = arith.extui %2 : i1 to i32
    %c0_i32_1 = arith.constant 0 : i32
    %4 = arith.cmpi ne, %3, %c0_i32_1 : i32
    scf.if %4 {
      %cst_38 = arith.constant 0.000000e+00 : f32
      %71 = vector.broadcast %cst_38 : f32 to vector<1x1xf32>
      %c0_39 = arith.constant 0 : index
      %c0_40 = arith.constant 0 : index
      %72 = vector.load %arg6[%c0_39, %c0_40] : memref<1x1xf32, #tpu.memory_space<vmem>>, vector<1x1xf32>
      tpu.vector_store %arg6[%c0_39, %c0_40], %71 {strides = array<i32>} : memref<1x1xf32, #tpu.memory_space<vmem>>, vector<1x1xf32>,
    } else {
    }
    %c0 = arith.constant 0 : index
    %c0_2 = arith.constant 0 : index
    %5 = vector.load %arg3[%c0, %c0_2] : memref<16x8xf32, #tpu.memory_space<vmem>>, vector<16x8xf32>
    %c0_3 = arith.constant 0 : index
    %c0_4 = arith.constant 0 : index
    %6 = vector.load %arg4[%c0_3, %c0_4] : memref<16x1xf32, #tpu.memory_space<vmem>>, vector<16x1xf32>
    %cst = arith.constant 0.000000e+00 : f32
    %7 = vector.broadcast %cst : f32 to vector<1x1xf32>
    %c0_5 = arith.constant 0 : index
    %c0_6 = arith.constant 0 : index
    %c0_7 = arith.constant 0 : index
    %8 = vector.load %arg2[%c0_5, %c0_6, %c0_7] : memref<4x8x256xf32, #tpu.memory_space<vmem>>, vector<1x8x256xf32>
    %9 = vector.shape_cast %8 : vector<1x8x256xf32> to vector<8x256xf32>
    %c0_8 = arith.constant 0 : index
    %c0_9 = arith.constant 0 : index
    %c0_10 = arith.constant 0 : index
    %10 = vector.load %arg5[%c0_8, %c0_9, %c0_10] : memref<4x16x256xf32, #tpu.memory_space<vmem>>, vector<1x16x256xf32>
    %11 = vector.shape_cast %10 : vector<1x16x256xf32> to vector<16x256xf32>
    %cst_11 = arith.constant dense<0.000000e+00> : vector<16x256xf32>
    %12 = tpu.matmul %5, %9, %cst_11 {dimension_numbers = #tpu.dot_dimension_numbers<[1], [0], [0], [1], [0, 0, 1, 1], [], []>} : vector<16x8xf32>, vector<8x256xf32>, vector<16x256xf32> -> vector<16x256xf32>
    %13 = vector.broadcast %6 : vector<16x1xf32> to vector<16x256xf32>
    %14 = arith.addf %12, %13 : vector<16x256xf32>
    %15 = arith.subf %14, %11 : vector<16x256xf32>
    %16 = arith.mulf %15, %15 : vector<16x256xf32>
    %17 = vector.shape_cast %16 : vector<16x256xf32> to vector<1x16x256xf32>
    %cst_12 = arith.constant dense<0.000000e+00> : vector<1xf32>
    %18 = vector.multi_reduction <add>, %17, %cst_12 [1, 2] : vector<1x16x256xf32> to vector<1xf32>
    %19 = vector.shape_cast %18 : vector<1xf32> to vector<1x1x1xf32>
    %20 = vector.extract %19[0, 0, 0] : f32 from vector<1x1x1xf32>
    %21 = vector.broadcast %20 : f32 to vector<1x1xf32>
    %22 = arith.addf %7, %21 : vector<1x1xf32>
    %c1 = arith.constant 1 : index
    %c0_13 = arith.constant 0 : index
    %c0_14 = arith.constant 0 : index
    %23 = vector.load %arg2[%c1, %c0_13, %c0_14] : memref<4x8x256xf32, #tpu.memory_space<vmem>>, vector<1x8x256xf32>
    %24 = vector.shape_cast %23 : vector<1x8x256xf32> to vector<8x256xf32>
    %c1_15 = arith.constant 1 : index
    %c0_16 = arith.constant 0 : index
    %c0_17 = arith.constant 0 : index
    %25 = vector.load %arg5[%c1_15, %c0_16, %c0_17] : memref<4x16x256xf32, #tpu.memory_space<vmem>>, vector<1x16x256xf32>
    %26 = vector.shape_cast %25 : vector<1x16x256xf32> to vector<16x256xf32>
    %cst_18 = arith.constant dense<0.000000e+00> : vector<16x256xf32>
    %27 = tpu.matmul %5, %24, %cst_18 {dimension_numbers = #tpu.dot_dimension_numbers<[1], [0], [0], [1], [0, 0, 1, 1], [], []>} : vector<16x8xf32>, vector<8x256xf32>, vector<16x256xf32> -> vector<16x256xf32>
    %28 = vector.broadcast %6 : vector<16x1xf32> to vector<16x256xf32>
    %29 = arith.addf %27, %28 : vector<16x256xf32>
    %30 = arith.subf %29, %26 : vector<16x256xf32>
    %31 = arith.mulf %30, %30 : vector<16x256xf32>
    %32 = vector.shape_cast %31 : vector<16x256xf32> to vector<1x16x256xf32>
    %cst_19 = arith.constant dense<0.000000e+00> : vector<1xf32>
    %33 = vector.multi_reduction <add>, %32, %cst_19 [1, 2] : vector<1x16x256xf32> to vector<1xf32>
    %34 = vector.shape_cast %33 : vector<1xf32> to vector<1x1x1xf32>
    %35 = vector.extract %34[0, 0, 0] : f32 from vector<1x1x1xf32>
    %36 = vector.broadcast %35 : f32 to vector<1x1xf32>
    %37 = arith.addf %22, %36 : vector<1x1xf32>
    %c2 = arith.constant 2 : index
    %c0_20 = arith.constant 0 : index
    %c0_21 = arith.constant 0 : index
    %38 = vector.load %arg2[%c2, %c0_20, %c0_21] : memref<4x8x256xf32, #tpu.memory_space<vmem>>, vector<1x8x256xf32>
    %39 = vector.shape_cast %38 : vector<1x8x256xf32> to vector<8x256xf32>
    %c2_22 = arith.constant 2 : index
    %c0_23 = arith.constant 0 : index
    %c0_24 = arith.constant 0 : index
    %40 = vector.load %arg5[%c2_22, %c0_23, %c0_24] : memref<4x16x256xf32, #tpu.memory_space<vmem>>, vector<1x16x256xf32>
    %41 = vector.shape_cast %40 : vector<1x16x256xf32> to vector<16x256xf32>
    %cst_25 = arith.constant dense<0.000000e+00> : vector<16x256xf32>
    %42 = tpu.matmul %5, %39, %cst_25 {dimension_numbers = #tpu.dot_dimension_numbers<[1], [0], [0], [1], [0, 0, 1, 1], [], []>} : vector<16x8xf32>, vector<8x256xf32>, vector<16x256xf32> -> vector<16x256xf32>
    %43 = vector.broadcast %6 : vector<16x1xf32> to vector<16x256xf32>
    %44 = arith.addf %42, %43 : vector<16x256xf32>
    %45 = arith.subf %44, %41 : vector<16x256xf32>
    %46 = arith.mulf %45, %45 : vector<16x256xf32>
    %47 = vector.shape_cast %46 : vector<16x256xf32> to vector<1x16x256xf32>
    %cst_26 = arith.constant dense<0.000000e+00> : vector<1xf32>
    %48 = vector.multi_reduction <add>, %47, %cst_26 [1, 2] : vector<1x16x256xf32> to vector<1xf32>
    %49 = vector.shape_cast %48 : vector<1xf32> to vector<1x1x1xf32>
    %50 = vector.extract %49[0, 0, 0] : f32 from vector<1x1x1xf32>
    %51 = vector.broadcast %50 : f32 to vector<1x1xf32>
    %52 = arith.addf %37, %51 : vector<1x1xf32>
    %c3 = arith.constant 3 : index
    %c0_27 = arith.constant 0 : index
    %c0_28 = arith.constant 0 : index
    %53 = vector.load %arg2[%c3, %c0_27, %c0_28] : memref<4x8x256xf32, #tpu.memory_space<vmem>>, vector<1x8x256xf32>
    %54 = vector.shape_cast %53 : vector<1x8x256xf32> to vector<8x256xf32>
    %c3_29 = arith.constant 3 : index
    %c0_30 = arith.constant 0 : index
    %c0_31 = arith.constant 0 : index
    %55 = vector.load %arg5[%c3_29, %c0_30, %c0_31] : memref<4x16x256xf32, #tpu.memory_space<vmem>>, vector<1x16x256xf32>
    %56 = vector.shape_cast %55 : vector<1x16x256xf32> to vector<16x256xf32>
    %cst_32 = arith.constant dense<0.000000e+00> : vector<16x256xf32>
    %57 = tpu.matmul %5, %54, %cst_32 {dimension_numbers = #tpu.dot_dimension_numbers<[1], [0], [0], [1], [0, 0, 1, 1], [], []>} : vector<16x8xf32>, vector<8x256xf32>, vector<16x256xf32> -> vector<16x256xf32>
    %58 = vector.broadcast %6 : vector<16x1xf32> to vector<16x256xf32>
    %59 = arith.addf %57, %58 : vector<16x256xf32>
    %60 = arith.subf %59, %56 : vector<16x256xf32>
    %61 = arith.mulf %60, %60 : vector<16x256xf32>
    %62 = vector.shape_cast %61 : vector<16x256xf32> to vector<1x16x256xf32>
    %cst_33 = arith.constant dense<0.000000e+00> : vector<1xf32>
    %63 = vector.multi_reduction <add>, %62, %cst_33 [1, 2] : vector<1x16x256xf32> to vector<1xf32>
    %64 = vector.shape_cast %63 : vector<1xf32> to vector<1x1x1xf32>
    %65 = vector.extract %64[0, 0, 0] : f32 from vector<1x1x1xf32>
    %66 = vector.broadcast %65 : f32 to vector<1x1xf32>
    %67 = arith.addf %52, %66 : vector<1x1xf32>
    %c0_34 = arith.constant 0 : index
    %c0_35 = arith.constant 0 : index
    %68 = vector.load %arg6[%c0_34, %c0_35] : memref<1x1xf32, #tpu.memory_space<vmem>>, vector<1x1xf32>
    %69 = arith.addf %68, %67 : vector<1x1xf32>
    %c0_36 = arith.constant 0 : index
    %c0_37 = arith.constant 0 : index
    %70 = vector.load %arg6[%c0_36, %c0_37] : memref<1x1xf32, #tpu.memory_space<vmem>>, vector<1x1xf32>
    tpu.vector_store %arg6[%c0_36, %c0_37], %69 {strides = array<i32>} : memref<1x1xf32, #tpu.memory_space<vmem>>, vector<1x1xf32>,
    return
  }
  func.func @transform_0(%arg0: i32, %arg1: i32) -> (i32, i32, i32) {
    %c0_i32 = arith.constant 0 : i32
    %c0_i32_0 = arith.constant 0 : i32
    return %arg0, %c0_i32, %arg1 : i32, i32, i32
  }
  func.func @transform_1(%arg0: i32, %arg1: i32) -> (i32, i32) {
    %c0_i32 = arith.constant 0 : i32
    %c0_i32_0 = arith.constant 0 : i32
    %c0_i32_1 = arith.constant 0 : i32
    return %c0_i32, %c0_i32_0 : i32, i32
  }
  func.func @transform_2(%arg0: i32, %arg1: i32) -> (i32, i32) {
    %c0_i32 = arith.constant 0 : i32
    %c0_i32_0 = arith.constant 0 : i32
    %c0_i32_1 = arith.constant 0 : i32
    return %c0_i32, %c0_i32_0 : i32, i32
  }
  func.func @transform_3(%arg0: i32, %arg1: i32) -> (i32, i32, i32) {
    %c0_i32 = arith.constant 0 : i32
    %c0_i32_0 = arith.constant 0 : i32
    return %arg0, %c0_i32, %arg1 : i32, i32, i32
  }
  func.func @transform_4(%arg0: i32, %arg1: i32) -> (i32, i32) {
    %c0_i32 = arith.constant 0 : i32
    %c0_i32_0 = arith.constant 0 : i32
    %c0_i32_1 = arith.constant 0 : i32
    return %c0_i32, %c0_i32_0 : i32, i32
  }
}

</mosaic_0001>

<bundles_post_ra>
// kernel: _lambda_.5
= control target key start
LH: loop header
LB: loop body
LE: loop exit
PB: predicated region body
PF: predicated region fallthrough
CT: control target
= control target key end

     0   :  { %s85_s0 = inlined_call_operand.vmem [shape: f32[32,128], index: 0, kind: input, shape index: {}]   ;;  %s86_s1 = inlined_call_operand.vmem [shape: f32[32,128], index: 1, kind: input, shape index: {}]   ;;  %s87_s2 = inlined_call_operand.vmem [shape: f32[8,128], index: 2, kind: output, shape index: {}]  }
   0x1   :  { %v16_v0 = vld [vmem:[%s85_s0] sm:$0xff]  ;;  %v17_v1 = vld [vmem:[%s85_s0 + $0x8] sm:$0xff]  ;;  %v18_v2 = vld [vmem:[%s85_s0 + $0x10] sm:$0xff] }
   0x2   :  { %v19_v3 = vld [vmem:[%s85_s0 + $0x18] sm:$0xff]  ;;  %v20_v4 = vld [vmem:[%s86_s1] sm:$0xff]  ;;  %v21_v5 = vld [vmem:[%s86_s1 + $0x8] sm:$0xff] }
   0x3   :  { %v22_v6 = vld [vmem:[%s86_s1 + $0x10] sm:$0xff]  ;;  %v23_v7 = vld [vmem:[%s86_s1 + $0x18] sm:$0xff]  ;;  %v24_v8 = vsub.f32 %v16_v0, %v20_v4  ;;  %v25_v9 = vsub.f32 %v17_v1, %v21_v5 }
   0x4   :  { %v26_v10 = vsub.f32 %v18_v2, %v22_v6  ;;  %v27_v11 = vsub.f32 %v19_v3, %v23_v7 }
   0x5   :  { %v28_v12 = vmul.f32 %v24_v8, %v24_v8  ;;  %v29_v13 = vmul.f32 %v25_v9, %v25_v9 }
   0x6   :  { %v30_v14 = vmul.f32 %v26_v10, %v26_v10  ;;  %v31_v15 = vmul.f32 %v27_v11, %v27_v11 }
   0x7   :  { %v33_v16 = vadd.f32 %v29_v13, %v28_v12 }
   0x9   :  { %v34_v17 = vadd.f32 %v33_v16, %v30_v14 }
   0xb   :  { %v35_v18 = vadd.f32 %v34_v17, %v31_v15 }
   0xd   :  { %37 = vst [vmem:[%s87_s2] sm:$0xff] %v35_v18 }

// kernel: _lambda_.3
= control target key start
LH: loop header
LB: loop body
LE: loop exit
PB: predicated region body
PF: predicated region fallthrough
CT: control target
= control target key end

     0   :  { %vm18_vm0 = vcmask 1043456   ;;  %v113_v4 = vmov 0   ;;  %v31_v24 = vlaneseq  ;;  %vm43_vm6 = vcmask 3072   ;;  %s161_s1 = inlined_call_operand.vmem [shape: f32[4,128], index: 1, kind: input, shape index: {}]   ;;  %s162_s0 = inlined_call_operand.vmem [shape: f32[4,128], index: 0, kind: input, shape index: {}]   ;;  %s163_s2 = inlined_call_operand.vmem [shape: s32[4,1], index: 2, kind: input, shape index: {}]   ;;  %s164_s3 = inlined_call_operand.vmem [shape: f32[4,1], index: 3, kind: output, shape index: {0}]   ;;  %s165_s4 = inlined_call_operand.vmem [shape: f32[4,1], index: 4, kind: output, shape index: {1}]  }
   0x1   :  { %v17_v0 = vld [vmem:[%s161_s1] sm:$0xf]  ;;  %97 = vset.pattern.permute.xlu2 %v113_v4  ;;  %98 = vset.pattern.permute.xlu0 %v113_v4 }
   0x2   :  { %v54_v1 = vsel %vm18_vm0, %v17_v0, -inf  ;;  %v16_v2 = vld [vmem:[%s162_s0] sm:$0xf]  ;;  %v32_v29 = vand.u32 127, %v31_v24 }
   0x3   :  { %55 = vmax.xlane.f32.xlu0 %v54_v1  ;;  %v19_v3 = vsel %vm18_vm0, %v16_v2, -inf  ;;  %v33_v20 = vld [vmem:[%s163_s2] sm:$0xf] }
   0xb   :  { %20 = vmax.xlane.f32.xlu0 %v19_v3 }
  0x76   :  { %v56_v5 = vpop.xlane.xlu0 %55 }
  0x77   :  { %v57_v6 = vsub.f32 %v17_v0, %v56_v5 }
  0x79   :  { %v58_v7 = vmul.f32 0.25, %v57_v6 }
  0x7b   :  { %v59_v8 = vmul.f32 1.442695, %v58_v7 }
  0x7d   :  { %99 = vpow2.f32 %v59_v8 }
  0x7e   :  { %v21_v9 = vpop.xlane.xlu0 %20 }
  0x7f   :  { %v22_v10 = vsub.f32 %v16_v2, %v21_v9 }
  0x81   :  { %v23_v11 = vmul.f32 1.442695, %v22_v10  ;;  %v45_v12 = vmul.f32 0.25, %v22_v10 }
  0x83   :  { %v100_v13 = vpop.eup %99  ;;  %101 = vpow2.f32 %v23_v11  ;;  %v46_v14 = vmul.f32 1.442695, %v45_v12 }
  0x84   :  { %v61_v15 = vsel %vm18_vm0, %v100_v13, 0.0 }
  0x85   :  { %62 = vadd.xlane.f32.xlu1 %v61_v15  ;;  %103 = vpow2.f32 %v46_v14 }
  0x89   :  { %v102_v16 = vpop.eup %101 }
  0x8a   :  { %v25_v17 = vsel %vm18_vm0, %v102_v16, 0.0 }
  0x8b   :  { %v104_v18 = vpop.eup %103  ;;  %26 = vadd.xlane.f32.xlu2 %v25_v17 }
  0x8c   :  { %v48_v19 = vsel %vm18_vm0, %v104_v18, 0.0 }
  0x8d   :  { %49 = vadd.xlane.f32.xlu1 %v48_v19 }
  0xa3   :  { %35 = vperm.xlu2 %97, %v33_v20  }
  0xf8   :  { %v63_v21 = vpop.xlane.xlu1 %62 }
  0xf9   :  { %105 = vrcp.f32 %v63_v21  ;;  %v78_v30 = vand.u32 2147483648, %v63_v21  ;;  %v76_v32 = vand.u32 2147483647, %v63_v21  ;;  %vm72_vm2 = vweird.f32 %v63_v21 }
  0xfa   :  { %107 = vlog2.f32 %v63_v21 }
  0xfb   :  { %v79_v39 = vor.u32 1.1754944e-38, %v78_v30  ;;  %vm77_vm5 = vcmp.eq.f32.partialorder %v76_v32, 8.507059e+37 }
  0xfe   :  { %v27_v22 = vpop.xlane.xlu2 %26 }
  0xff   :  { %v106_v23 = vpop.eup %105  ;;  %109 = vlog2.f32 %v27_v22 }
 0x100   :  { %v68_v25 = vmul.f32 %v106_v23, %v63_v21  ;;  %v50_v26 = vpop.xlane.xlu1 %49  ;;  %v108_v28 = vpop.eup %107  ;;  %vm73_vm1 = vweird.f32 %v106_v23 }
 0x101   :  { %111 = vlog2.f32 %v50_v26  ;;  %v65_v36 = vmul.f32 0.6931472, %v108_v28  ;;  %vm74_vm4 = vmor %vm72_vm2, %vm73_vm1 }
 0x102   :  { %v69_v27 = vsub.f32 1.0, %v68_v25 }
 0x103   :  { %v66_v46 = vsub.f32 %v58_v7, %v65_v36 }
 0x104   :  { %v70_v31 = vmul.f32 %v106_v23, %v69_v27 }
 0x105   :  { %v110_v33 = vpop.eup %109 }
 0x106   :  { %v29_v34 = vmul.f32 0.6931472, %v110_v33  ;;  %v36_v35 = vpop.permute.xlu2 %35  ;;  %v71_v37 = vadd.f32 %v106_v23, %v70_v31 }
 0x107   :  { %v112_v38 = vpop.eup %111  ;;  %vm37_vm3 = vcmp.eq.s32.totalorder %v32_v29, %v36_v35 }
 0x108   :  { %v52_v40 = vmul.f32 0.6931472, %v112_v38  ;;  %v30_v41 = vsub.f32 %v22_v10, %v29_v34  ;;  %v75_v42 = vsel %vm74_vm4, %v106_v23, %v71_v37 }
 0x109   :  { %v80_v43 = vsel %vm77_vm5, %v79_v39, %v75_v42 }
 0x10a   :  { %v53_v44 = vsub.f32 %v45_v12, %v52_v40  ;;  %v38_v45 = vsel %vm37_vm3, %v30_v41, 0.0  ;;  %v81_v48 = vmul.f32 %v100_v13, %v80_v43 }
 0x10b   :  { %v39_v47 = vsel %vm18_vm0, %v38_v45, 0.0 }
 0x10c   :  { %40 = vadd.xlane.f32.xlu0 %v39_v47  ;;  %v82_v49 = vsub.f32 %v66_v46, %v53_v44 }
 0x10e   :  { %v83_v50 = vmul.f32 %v82_v49, %v81_v48 }
 0x110   :  { %v84_v51 = vsel %vm18_vm0, %v83_v50, 0.0 }
 0x111   :  { %85 = vadd.xlane.f32.xlu1 %v84_v51 }
 0x17f   :  { %v41_v52 = vpop.xlane.xlu0 %40 }
 0x180   :  { %v42_v53 = vsub.f32 0.0, %v41_v52 }
 0x182   :  { %44 = vst.msk [vmem:[%s164_s3] sm:$0xf] %vm43_vm6, %v42_v53 }
 0x184   :  { %v86_v54 = vpop.xlane.xlu1 %85 }
 0x185   :  { %87 = vst.msk [vmem:[%s165_s4] sm:$0xf] %vm43_vm6, %v86_v54 }

// kernel: _lambda_.4
= control target key start
LH: loop header
LB: loop body
LE: loop exit
PB: predicated region body
PF: predicated region fallthrough
CT: control target
= control target key end

     0   :  { %vm46_vm0 = vcmask 64512   ;;  %s584_s0 = inlined_call_operand.vmem [shape: f32[4,8,256], index: 0, kind: input, shape index: {}]   ;;  %s585_s1 = inlined_call_operand.vmem [shape: f32[16,8], index: 1, kind: input, shape index: {}]   ;;  %s586_s2 = inlined_call_operand.vmem [shape: f32[16,1], index: 2, kind: input, shape index: {}]   ;;  %s587_s3 = inlined_call_operand.vmem [shape: f32[4,16,256], index: 3, kind: input, shape index: {}]   ;;  %s588_s4 = inlined_call_operand.hbm [shape: f32[1,1], index: 4, kind: output, shape index: {}]  }
   0x1   :  { %v30_v0 = vld [vmem:[%s584_s0] sm:$0xff]  ;;  %v31_v1 = vld [vmem:[%s584_s0 + $0x8] sm:$0xff]  ;;  %v373_v2 = vld [vmem:[%s584_s0 + $0x10] sm:$0xff] }
   0x2   :  { %68 = vmatpush.msra.mxu0 %v30_v0  ;;  %91 = vmatpush.msra.mxu1 %v31_v1  ;;  %v374_v3 = vld [vmem:[%s584_s0 + $0x18] sm:$0xff]  ;;  %v26_v4 = vld [vmem:[%s585_s1] sm:$0xff]  ;;  %v384_v6 = vld [vmem:[%s584_s0 + $0x28] sm:$0xff] }
   0x3   :  { %144 = vmatpush.msra.mxu2 %v373_v2  ;;  %167 = vmatpush.msra.mxu3 %v374_v3  ;;  %v383_v5 = vld [vmem:[%s584_s0 + $0x20] sm:$0xff]  ;;  %v393_v7 = vld [vmem:[%s584_s0 + $0x30] sm:$0xff]  ;;  %v394_v8 = vld [vmem:[%s584_s0 + $0x38] sm:$0xff] }
   0x4   :  { %369 = vmatmul.msk.f32.vlgmr.msra.gmra.mxu0 %vm46_vm0, %v26_v4  ;;  %371 = vmatmul.msk.f32.vlgmr.msra.gmra.mxu1 %vm46_vm0, %v26_v4 }
   0x5   :  { %379 = vmatmul.msk.f32.vlgmr.msra.gmra.mxu2 %vm46_vm0, %v26_v4  ;;  %381 = vmatmul.msk.f32.vlgmr.msra.gmra.mxu3 %vm46_vm0, %v26_v4 }
   0x6   :  { %9 = vsyncpa [#allocation3], 0  ;;  %220 = vmatpush.msrb.mxu0 %v383_v5  ;;  %243 = vmatpush.msrb.mxu1 %v384_v6  ;;  %v28_v9 = vld [vmem:[%s586_s2] sm:$0xff]  ;;  %v441_v10 = vmov 0   ;;  %v27_v11 = vld [vmem:[%s585_s1 + $0x8] sm:$0xff]  ;;  %vm24_vm1 = vcmask 0  }
   0x7   :  { %296 = vmatpush.msrb.mxu2 %v393_v7  ;;  %319 = vmatpush.msrb.mxu3 %v394_v8  ;;  %v29_v12 = vld [vmem:[%s586_s2 + $0x8] sm:$0xff]  ;;  %v32_v18 = vld [vmem:[%s587_s3] sm:$0xff]  ;;  %v34_v27 = vld [vmem:[%s587_s3 + $0x10] sm:$0xff]  ;;  %s443_s16 = smov [#allocation2]   ;;  %s360_s20 = sshll.u32 %s588_s4, 4  ;;  %s361_s20 = int_to_ptr.hbm [resolvable:$true] %s360_s20 }
   0x8   :  { %414 = vset.pattern.permute.xlu0 %v441_v10  ;;  %v33_v19 = vld [vmem:[%s587_s3 + $0x8] sm:$0xff]  ;;  %v35_v30 = vld [vmem:[%s587_s3 + $0x18] sm:$0xff]  ;;  %v375_v33 = vld [vmem:[%s587_s3 + $0x20] sm:$0xff]  ;;  %s358_s17 = sshll.u32 %s443_s16, 4  ;;  %s359_s17 = int_to_ptr.vmem [resolvable:$true] %s358_s17 }
   0x9   :  { %38 = vperm.xlu0 %414, %v28_v9   ;;  %v376_v34 = vld [vmem:[%s587_s3 + $0x28] sm:$0xff]  ;;  %v377_v44 = vld [vmem:[%s587_s3 + $0x30] sm:$0xff]  ;;  %v378_v51 = vld [vmem:[%s587_s3 + $0x38] sm:$0xff] }
   0xa   :  { %v385_v55 = vld [vmem:[%s587_s3 + $0x40] sm:$0xff]  ;;  %v386_v60 = vld [vmem:[%s587_s3 + $0x48] sm:$0xff]  ;;  %v387_v9 = vld [vmem:[%s587_s3 + $0x50] sm:$0xff] }
   0xc   :  { %370 = vmatmul.msk.f32.gmra.mxu0 %vm46_vm0, %v27_v11  ;;  %372 = vmatmul.msk.f32.gmra.mxu1 %vm46_vm0, %v27_v11 }
   0xd   :  { %380 = vmatmul.msk.f32.gmra.mxu2 %vm46_vm0, %v27_v11  ;;  %382 = vmatmul.msk.f32.gmra.mxu3 %vm46_vm0, %v27_v11 }
  0x11   :  { %43 = vperm.xlu0 %414, %v29_v12   ;;  %v388_v12 = vld [vmem:[%s587_s3 + $0x58] sm:$0xff] }
  0x14   :  { %389 = vmatmul.msk.f32.vlgmr.msrb.gmra.mxu0 %vm46_vm0, %v26_v4  ;;  %391 = vmatmul.msk.f32.vlgmr.msrb.gmra.mxu1 %vm46_vm0, %v26_v4 }
  0x15   :  { %399 = vmatmul.msk.f32.vlgmr.msrb.gmra.mxu2 %vm46_vm0, %v26_v4  ;;  %401 = vmatmul.msk.f32.vlgmr.msrb.gmra.mxu3 %vm46_vm0, %v26_v4 }
  0x1c   :  { %390 = vmatmul.msk.f32.gmra.mxu0 %vm46_vm0, %v27_v11  ;;  %392 = vmatmul.msk.f32.gmra.mxu1 %vm46_vm0, %v27_v11 }
  0x1d   :  { %400 = vmatmul.msk.f32.gmra.mxu2 %vm46_vm0, %v27_v11  ;;  %402 = vmatmul.msk.f32.gmra.mxu3 %vm46_vm0, %v27_v11 }
  0x7b   :  { %v39_v13 = vpop.permute.xlu0 %38 }
  0x81   :  { %v70_v14 = vpop.f32.mrf.mxu0  ;;  %v93_v15 = vpop.f32.mrf.mxu1 }
  0x82   :  { %v71_v16 = vadd.f32 %v70_v14, %v39_v13  ;;  %v94_v17 = vadd.f32 %v93_v15, %v39_v13  ;;  %v395_v15 = vld [vmem:[%s587_s3 + $0x60] sm:$0xff] }
  0x83   :  { %v527_v22 = vpop.permute.xlu0 %43 }
  0x84   :  { %v99_v20 = vsub.f32 %v71_v16, %v32_v18  ;;  %v100_v21 = vsub.f32 %v94_v17, %v33_v19  ;;  %v396_v16 = vld [vmem:[%s587_s3 + $0x68] sm:$0xff] }
  0x86   :  { %v103_v31 = vmul.f32 %v99_v20, %v99_v20  ;;  %v104_v32 = vmul.f32 %v100_v21, %v100_v21 }
  0x88   :  { %v146_v23 = vpop.f32.mrf.mxu2  ;;  %v169_v24 = vpop.f32.mrf.mxu3  ;;  %v107_v43 = vadd.f32 %v104_v32, %v103_v31 }
  0x89   :  { %v147_v25 = vadd.f32 %v146_v23, %v39_v13  ;;  %v170_v26 = vadd.f32 %v169_v24, %v39_v13  ;;  %v73_v28 = vpop.f32.mrf.mxu0  ;;  %v96_v29 = vpop.f32.mrf.mxu1 }
  0x8a   :  { %v74_v35 = vadd.f32 %v73_v28, %v527_v22  ;;  %v97_v36 = vadd.f32 %v96_v29, %v527_v22 }
  0x8b   :  { %v175_v39 = vsub.f32 %v147_v25, %v375_v33  ;;  %v176_v40 = vsub.f32 %v170_v26, %v376_v34  ;;  %v397_v26 = vld [vmem:[%s587_s3 + $0x70] sm:$0xff]  ;;  %v398_v34 = vld [vmem:[%s587_s3 + $0x78] sm:$0xff] }
  0x8c   :  { %v101_v37 = vsub.f32 %v74_v35, %v34_v27  ;;  %v102_v38 = vsub.f32 %v97_v36, %v35_v30 }
  0x8d   :  { %v179_v48 = vmul.f32 %v175_v39, %v175_v39  ;;  %v180_v49 = vmul.f32 %v176_v40, %v176_v40 }
  0x8e   :  { %v105_v41 = vmul.f32 %v101_v37, %v101_v37  ;;  %v106_v42 = vmul.f32 %v102_v38, %v102_v38 }
  0x8f   :  { %v183_v62 = vadd.f32 %v180_v49, %v179_v48 }
  0x90   :  { %v149_v45 = vpop.f32.mrf.mxu2  ;;  %v172_v46 = vpop.f32.mrf.mxu3  ;;  %v108_v47 = vadd.f32 %v107_v43, %v105_v41 }
  0x91   :  { %v150_v50 = vadd.f32 %v149_v45, %v527_v22  ;;  %v173_v52 = vadd.f32 %v172_v46, %v527_v22  ;;  %v222_v53 = vpop.f32.mrf.mxu0  ;;  %v245_v54 = vpop.f32.mrf.mxu1 }
  0x92   :  { %v223_v56 = vadd.f32 %v222_v53, %v39_v13  ;;  %v246_v57 = vadd.f32 %v245_v54, %v39_v13  ;;  %v109_v58 = vadd.f32 %v108_v47, %v106_v42 }
  0x93   :  { %v177_v59 = vsub.f32 %v150_v50, %v377_v44  ;;  %v178_v61 = vsub.f32 %v173_v52, %v378_v51 }
  0x94   :  { %110 = vadd.xlane.f32.xlu1 %v109_v58  ;;  %v251_v0 = vsub.f32 %v223_v56, %v385_v55  ;;  %v252_v1 = vsub.f32 %v246_v57, %v386_v60 }
  0x95   :  { %v181_v63 = vmul.f32 %v177_v59, %v177_v59  ;;  %v182_v3 = vmul.f32 %v178_v61, %v178_v61 }
  0x96   :  { %v255_v6 = vmul.f32 %v251_v0, %v251_v0  ;;  %v256_v14 = vmul.f32 %v252_v1, %v252_v1 }
  0x97   :  { %v184_v2 = vadd.f32 %v183_v62, %v181_v63 }
  0x98   :  { %v298_v4 = vpop.f32.mrf.mxu2  ;;  %v321_v5 = vpop.f32.mrf.mxu3  ;;  %v259_v25 = vadd.f32 %v256_v14, %v255_v6 }
  0x99   :  { %v299_v7 = vadd.f32 %v298_v4, %v39_v13  ;;  %v322_v8 = vadd.f32 %v321_v5, %v39_v13  ;;  %v225_v10 = vpop.f32.mrf.mxu0  ;;  %v248_v11 = vpop.f32.mrf.mxu1  ;;  %v185_v18 = vadd.f32 %v184_v2, %v182_v3 }
  0x9a   :  { %v226_v13 = vadd.f32 %v225_v10, %v527_v22  ;;  %v249_v17 = vadd.f32 %v248_v11, %v527_v22 }
  0x9b   :  { %v327_v21 = vsub.f32 %v299_v7, %v395_v15  ;;  %v328_v23 = vsub.f32 %v322_v8, %v396_v16  ;;  %v442_v7 = vmov 0.0  }
  0x9c   :  { %v253_v19 = vsub.f32 %v226_v13, %v387_v9  ;;  %186 = vadd.xlane.f32.xlu1 %v185_v18  ;;  %v254_v20 = vsub.f32 %v249_v17, %v388_v12  ;;  %25 = vst.msk [vmem:[#allocation2] sm:$0x1] %vm24_vm1, %v442_v7 }
  0x9d   :  { %v331_v31 = vmul.f32 %v327_v21, %v327_v21  ;;  %v332_v32 = vmul.f32 %v328_v23, %v328_v23 }
  0x9e   :  { %v257_v24 = vmul.f32 %v253_v19, %v253_v19  ;;  %v258_v29 = vmul.f32 %v254_v20, %v254_v20 }
  0x9f   :  { %v335_v39 = vadd.f32 %v332_v32, %v331_v31 }
  0xa0   :  { %v301_v27 = vpop.f32.mrf.mxu2  ;;  %v324_v28 = vpop.f32.mrf.mxu3  ;;  %v260_v30 = vadd.f32 %v259_v25, %v257_v24 }
  0xa1   :  { %v302_v33 = vadd.f32 %v301_v27, %v527_v22  ;;  %v325_v35 = vadd.f32 %v324_v28, %v527_v22 }
  0xa2   :  { %v261_v36 = vadd.f32 %v260_v30, %v258_v29 }
  0xa3   :  { %v329_v37 = vsub.f32 %v302_v33, %v397_v26  ;;  %v330_v38 = vsub.f32 %v325_v35, %v398_v34  ;;  %v349_v15 = vld [vmem:[#allocation2] sm:$0x1] }
  0xa4   :  { %262 = vadd.xlane.f32.xlu2 %v261_v36 }
  0xa5   :  { %v333_v40 = vmul.f32 %v329_v37, %v329_v37  ;;  %v334_v42 = vmul.f32 %v330_v38, %v330_v38 }
  0xa7   :  { %v336_v41 = vadd.f32 %v335_v39, %v333_v40 }
  0xa9   :  { %v337_v43 = vadd.f32 %v336_v41, %v334_v42 }
  0xac   :  { %338 = vadd.xlane.f32.xlu2 %v337_v43 }
 0x107   :  { %v111_v44 = vpop.xlane.xlu1 %110 }
 0x108   :  { %v112_v45 = vrot.slane %v111_v44, 4 }
 0x10a   :  { %v113_v46 = vadd.f32 %v112_v45, %v111_v44 }
 0x10c   :  { %v114_v47 = vrot.slane %v113_v46, 2 }
 0x10e   :  { %v115_v48 = vadd.f32 %v114_v47, %v113_v46 }
 0x10f   :  { %v187_v49 = vpop.xlane.xlu1 %186 }
 0x110   :  { %v188_v50 = vrot.slane %v187_v49, 4  ;;  %v116_v51 = vrot.slane %v115_v48, 1 }
 0x112   :  { %v189_v52 = vadd.f32 %v188_v50, %v187_v49  ;;  %v117_v22 = vadd.f32 %v116_v51, %v115_v48 }
 0x114   :  { %v190_v53 = vrot.slane %v189_v52, 2  ;;  %403 = vpush %v117_v22 }
 0x116   :  { %v191_v54 = vadd.f32 %v190_v53, %v189_v52 }
 0x117   :  { %v263_v55 = vpop.xlane.xlu2 %262 }
 0x118   :  { %v264_v56 = vrot.slane %v263_v55, 4  ;;  %v192_v57 = vrot.slane %v191_v54, 1 }
 0x11a   :  { %v265_v58 = vadd.f32 %v264_v56, %v263_v55  ;;  %v193_v59 = vadd.f32 %v192_v57, %v191_v54 }
 0x11c   :  { %v266_v60 = vrot.slane %v265_v58, 2  ;;  %405 = vpush %v193_v59 }
 0x11e   :  { %v267_v61 = vadd.f32 %v266_v60, %v265_v58 }
 0x11f   :  { %v339_v62 = vpop.xlane.xlu2 %338 }
 0x120   :  { %v340_v63 = vrot.slane %v339_v62, 4  ;;  %v268_v0 = vrot.slane %v267_v61, 1 }
 0x122   :  { %v341_v1 = vadd.f32 %v340_v63, %v339_v62  ;;  %v269_v2 = vadd.f32 %v268_v0, %v267_v61 }
 0x124   :  { %v342_v3 = vrot.slane %v341_v1, 2  ;;  %407 = vpush %v269_v2 }
 0x126   :  { %v343_v4 = vadd.f32 %v342_v3, %v341_v1 }
 0x128   :  { %v344_v5 = vrot.slane %v343_v4, 1 }
 0x12a   :  { %v345_v6 = vadd.f32 %v344_v5, %v343_v4 }
 0x12c   :  { %409 = vpush %v345_v6 }
 0x145   :  { %s404_s3 = spop %403 }
 0x146   :  { %v119_v9 = vstv %s404_s3 }
 0x14d   :  { %s406_s13 = spop %405 }
 0x14e   :  { %v195_v8 = vstv %s406_s13 }
 0x14f   :  { %v196_v11 = vadd.f32 %v195_v8, %v119_v9 }
 0x155   :  { %s408_s14 = spop %407 }
 0x156   :  { %v271_v10 = vstv %s408_s14 }
 0x157   :  { %v272_v12 = vadd.f32 %v271_v10, %v196_v11 }
 0x15d   :  { %s410_s15 = spop %409 }
 0x15e   :  { %v347_v14 = vstv %s410_s15 }
 0x15f   :  { %v348_v16 = vadd.f32 %v347_v14, %v272_v12 }
 0x161   :  { %v350_v13 = vadd.f32 %v349_v15, %v348_v16 }
 0x163   :  { %352 = vst.msk [vmem:[#allocation2] sm:$0x1] %vm24_vm1, %v350_v13 }
 0x164   :  { %363 = dma.vmem_to_hbm [thread:$0]  %s359_s17, 16, %s361_s20, [#allocation3]  }
 0x165   :  { %439 = dma.done.wait [#allocation3], 16  }
 0x166   :  { %440 = vsyncadd [#allocation3], 4294967280 }
 0x167   :  { %368 = vsyncpa [#allocation3], 1 }

</bundles_post_ra>
